<compile_context>
chip_gen: v7x
topology: tpu7x:2x2x1
jax: 0.10.0
libtpu: 0.0.40
codegen_flags: <defaults>
</compile_context>

<pallas_src>
import jax
import jax.numpy as jnp
from jax.experimental import pallas as pl
from jax.experimental.pallas import tpu as pltpu

NEGATIVE_SLOPE = 0.01      # the torch module references a global `negative_slope`

IN_FEATURES = 8
OUT_FEATURES = 8
PACK = 128 // IN_FEATURES  # 16 samples packed per 128-wide lane row


def _linear_leaky_kernel(x_ref, w_ref, b_ref, o_ref):
    # x_ref: (tile_r, 128)  packed batch rows (16 samples x 8 features each)
    # w_ref: (128, 128)     block-diagonal, 16 copies of W^T   (VMEM-resident)
    # b_ref: (1, 128)       bias tiled 16x                      (VMEM-resident)
    # o_ref: (tile_r, 128)
    y = jnp.dot(x_ref[...], w_ref[...], preferred_element_type=jnp.float32)
    y = y + b_ref[...]
    # leaky-ReLU (equivalent to where(y>0, y, slope*y) for 0 <= slope <= 1)
    o_ref[...] = jnp.maximum(y, y * NEGATIVE_SLOPE).astype(o_ref.dtype)


def linear_leaky_relu(x, weight, bias, *, tile_rows=8192):
    """x: (B, 8) f32; weight: (out, in) = (8, 8) torch layout; bias: (8,)."""
    B = x.shape[0]
    dtype = x.dtype

    # Pad batch to a multiple of PACK so the packed view is exact.
    B_pad = ((B + PACK - 1) // PACK) * PACK
    if B_pad != B:
        x = jnp.pad(x, ((0, B_pad - B), (0, 0)))
    R = B_pad // PACK                                 # packed rows

    # Contiguous row-major reshape: no data movement.
    x_packed = x.reshape(R, PACK * IN_FEATURES)       # (R, 128)

    # Block-diagonal weight: block (s, s) = W^T so packed row @ BD applies the
    # linear layer independently to each of the 16 packed samples.
    w_bd = jnp.kron(jnp.eye(PACK, dtype=dtype), weight.T.astype(dtype))   # (128, 128)
    b_tiled = jnp.tile(bias.astype(dtype), PACK).reshape(1, PACK * OUT_FEATURES)

    # Tile selection: big blocks to amortize per-step overhead; multiple of 8
    # sublanes, or the full extent for small inputs.
    if R <= tile_rows:
        tr = R
    else:
        tr = (tile_rows // 8) * 8
        tr = max(tr, 8)
    grid = (pl.cdiv(R, tr),)

    itemsize = jnp.dtype(dtype).itemsize
    block_bytes = tr * 128 * itemsize
    # double-buffered input + output blocks, double-buffered resident w/b, margin
    vmem_bytes = 4 * block_bytes + 2 * (128 * 128 + 128) * itemsize + (2 << 20)

    cost = pl.CostEstimate(
        flops=2 * R * 128 * 128,
        transcendentals=0,
        bytes_accessed=(2 * R * 128 + 128 * 128 + 128) * itemsize,
    )

    y_packed = pl.pallas_call(
        _linear_leaky_kernel,
        out_shape=jax.ShapeDtypeStruct((R, PACK * OUT_FEATURES), dtype),
        grid=grid,
        in_specs=[
            pl.BlockSpec((tr, 128), lambda i: (i, 0)),      # packed x tile
            pl.BlockSpec((128, 128), lambda i: (0, 0)),     # block-diag weight (resident)
            pl.BlockSpec((1, 128), lambda i: (0, 0)),       # tiled bias        (resident)
        ],
        out_specs=pl.BlockSpec((tr, 128), lambda i: (i, 0)),
        compiler_params=pltpu.CompilerParams(
            dimension_semantics=("parallel",),
            vmem_limit_bytes=int(vmem_bytes),
        ),
        cost_estimate=cost,
    )(x_packed, w_bd, b_tiled)

    # Contiguous reshape back to (B_pad, 8); drop padding rows if any.
    out = y_packed.reshape(B_pad, OUT_FEATURES)
    if B_pad != B:
        out = out[:B]
    return out


if __name__ == "__main__":
    key = jax.random.PRNGKey(0)
    kx, kw, kb, kx2 = jax.random.split(key, 4)

    # Deterministic parameter init (mimics torch.nn.Linear uniform init bounds)
    bound = 1.0 / (IN_FEATURES ** 0.5)
    weight = jax.random.uniform(kw, (OUT_FEATURES, IN_FEATURES),
                                minval=-bound, maxval=bound, dtype=jnp.float32)
    bias = jax.random.uniform(kb, (OUT_FEATURES,),
                              minval=-bound, maxval=bound, dtype=jnp.float32)

    def ref_fn(x):
        y = x @ weight.T + bias
        return jnp.where(y > 0, y, y * NEGATIVE_SLOPE)

    # Case 1: small batch, not a multiple of 16 (exercises padding + single block)
    B1 = 4
    x1 = jax.random.normal(kx, (B1, IN_FEATURES), dtype=jnp.float32)
    out1 = linear_leaky_relu(x1, weight, bias)
    jax.block_until_ready(out1)
    assert out1.shape == (B1, OUT_FEATURES)
    assert jnp.allclose(out1, ref_fn(x1), atol=1e-5, rtol=1e-5)

    # Case 2: larger batch tiled over a multi-step grid (exercises pipelining path)
    B2 = 2048                                         # -> 128 packed rows
    x2 = jax.random.normal(kx2, (B2, IN_FEATURES), dtype=jnp.float32)
    out2 = linear_leaky_relu(x2, weight, bias, tile_rows=32)   # 4 grid steps
    jax.block_until_ready(out2)
    assert jnp.allclose(out2, ref_fn(x2), atol=1e-5, rtol=1e-5)

    print("KERNEL_OK")
</pallas_src>

<mosaic_0001>
module attributes {stable_mosaic.version = 11 : i64} {
  func.func @_linear_leaky_kernel(%arg0: i32, %arg1: memref<1x128xf32, #tpu.memory_space<vmem>>, %arg2: memref<128x128xf32, #tpu.memory_space<vmem>>, %arg3: memref<1x128xf32, #tpu.memory_space<vmem>>, %arg4: memref<1x128xf32, #tpu.memory_space<vmem>>) attributes {dimension_semantics = [#tpu.dimension_semantics<parallel>], iteration_bounds = array<i64: 1>, scalar_prefetch = 0 : i64, scratch_operands = 0 : i64, tpu.core_type = #tpu.core_type<tc>, window_params = [{transform_indices = @transform_0, window_bounds = array<i64: 1, 128>}, {pipeline_mode = #tpu.pipeline_mode<synchronous>, transform_indices = @transform_1, window_bounds = array<i64: 128, 128>}, {pipeline_mode = #tpu.pipeline_mode<synchronous>, transform_indices = @transform_2, window_bounds = array<i64: 1, 128>}, {transform_indices = @transform_3, window_bounds = array<i64: 1, 128>}]} {
    %c0 = arith.constant 0 : index
    %c0_0 = arith.constant 0 : index
    %0 = vector.load %arg1[%c0, %c0_0] : memref<1x128xf32, #tpu.memory_space<vmem>>, vector<1x128xf32>
    %c0_1 = arith.constant 0 : index
    %c0_2 = arith.constant 0 : index
    %1 = vector.load %arg2[%c0_1, %c0_2] : memref<128x128xf32, #tpu.memory_space<vmem>>, vector<128x128xf32>
    %cst = arith.constant dense<0.000000e+00> : vector<1x128xf32>
    %2 = tpu.matmul %0, %1, %cst {dimension_numbers = #tpu.dot_dimension_numbers<[1], [0], [0], [1], [0, 0, 1, 1], [], []>} : vector<1x128xf32>, vector<128x128xf32>, vector<1x128xf32> -> vector<1x128xf32>
    %c0_3 = arith.constant 0 : index
    %c0_4 = arith.constant 0 : index
    %3 = vector.load %arg3[%c0_3, %c0_4] : memref<1x128xf32, #tpu.memory_space<vmem>>, vector<1x128xf32>
    %4 = arith.addf %2, %3 : vector<1x128xf32>
    %cst_5 = arith.constant 0.00999999977 : f32
    %5 = vector.broadcast %cst_5 : f32 to vector<1x128xf32>
    %6 = arith.mulf %4, %5 : vector<1x128xf32>
    %7 = arith.maximumf %4, %6 : vector<1x128xf32>
    %c0_6 = arith.constant 0 : index
    %c0_7 = arith.constant 0 : index
    %8 = vector.load %arg4[%c0_6, %c0_7] : memref<1x128xf32, #tpu.memory_space<vmem>>, vector<1x128xf32>
    tpu.vector_store %arg4[%c0_6, %c0_7], %7 {strides = array<i32>} : memref<1x128xf32, #tpu.memory_space<vmem>>, vector<1x128xf32>,
    return
  }
  func.func @transform_0(%arg0: i32) -> (i32, i32) {
    %c0_i32 = arith.constant 0 : i32
    %c0_i32_0 = arith.constant 0 : i32
    return %arg0, %c0_i32 : i32, i32
  }
  func.func @transform_1(%arg0: i32) -> (i32, i32) {
    %c0_i32 = arith.constant 0 : i32
    %c0_i32_0 = arith.constant 0 : i32
    %c0_i32_1 = arith.constant 0 : i32
    return %c0_i32, %c0_i32_0 : i32, i32
  }
  func.func @transform_2(%arg0: i32) -> (i32, i32) {
    %c0_i32 = arith.constant 0 : i32
    %c0_i32_0 = arith.constant 0 : i32
    %c0_i32_1 = arith.constant 0 : i32
    return %c0_i32, %c0_i32_0 : i32, i32
  }
  func.func @transform_3(%arg0: i32) -> (i32, i32) {
    %c0_i32 = arith.constant 0 : i32
    %c0_i32_0 = arith.constant 0 : i32
    return %arg0, %c0_i32 : i32, i32
  }
}

</mosaic_0001>

<bundles_post_ra>
// kernel: tpu_custom_call.1
= control target key start
LH: loop header
LB: loop body
LE: loop exit
PB: predicated region body
PF: predicated region fallthrough
CT: control target
= control target key end

     0   :  { %8 = vsyncpa [#allocation3], 0  ;;  %s378_s0 = inlined_call_operand.hbm [shape: f32[1,128], index: 0, kind: input, shape index: {}]   ;;  %s379_s1 = inlined_call_operand.hbm [shape: f32[128,128], index: 1, kind: input, shape index: {}]   ;;  %s380_s2 = inlined_call_operand.vmem [shape: f32[1,128], index: 2, kind: input, shape index: {}]   ;;  %s381_s3 = inlined_call_operand.hbm [shape: f32[1,128], index: 3, kind: output, shape index: {}]  }
   0x1   :  { %9 = vsyncpa [#allocation6], 0 }
   0x2   :  { %10 = vsyncpa [#allocation4], 0  ;;  %s304_s12 = smov [#allocation2]   ;;  %s305_s14 = smov [#allocation5]  }
   0x3   :  { %s17_s13 = sshll.u32 %s304_s12, 4  ;;  %s26_s15 = sshll.u32 %s305_s14, 4  ;;  %s18_s13 = int_to_ptr.vmem [resolvable:$true] %s17_s13  ;;  %s332_s15 = int_to_ptr.vmem [resolvable:$true] %s26_s15 }
   0x4   :  { %s232_s18 = scalar_lea.hbm %s378_s0, 16 }
   0x5   :  { %p233_p0 = scmp.ne.s32.totalorder %s378_s0, %s232_s18  ;;  %p236_p1 = scmp.lt.u32.totalorder %s232_s18, %s378_s0 }
   0x7   :  { %p238_p2 = pnand %p236_p1, %p233_p0 }
   0x9   :  { %241 = shalt.err (!%p238_p2)
}
   0xa   :  { %s242_s23 = scalar_lea.vmem %s18_s13, 16  ;;  %s246_s24 = scalar_lea.vmem %s18_s13, 32 }
   0xb   :  { %p243_p3 = scmp.ne.s32.totalorder %s18_s13, %s242_s23  ;;  %p247_p4 = scmp.lt.s32.totalorder %s18_s13, %s18_s13 }
   0xc   :  { %p248_p5 = scmp.lt.s32.totalorder %s246_s24, %s242_s23 }
   0xe   :  { %p249_p6 = por %p248_p5, %p247_p4 }
  0x10   :  { %p250_p7 = pnand %p249_p6, %p243_p3 }
  0x12   :  { %253 = shalt.err (!%p250_p7)
}
  0x13   :  { %20 = dma.hbm_to_vmem [thread:$0]  %s378_s0, 16, %s18_s13, [#allocation3]  }
  0x14   :  { %s254_s29 = scalar_lea.hbm %s379_s1, 2048 }
  0x15   :  { %p255_p8 = scmp.ne.s32.totalorder %s379_s1, %s254_s29  ;;  %p258_p9 = scmp.lt.u32.totalorder %s254_s29, %s379_s1 }
  0x17   :  { %p260_p10 = pnand %p258_p9, %p255_p8 }
  0x19   :  { %263 = shalt.err (!%p260_p10)
}
  0x1a   :  { %s264_s7 = scalar_lea.vmem %s332_s15, 2048  ;;  %p269_p12 = scmp.lt.s32.totalorder %s332_s15, %s332_s15 }
  0x1b   :  { %p265_p11 = scmp.ne.s32.totalorder %s332_s15, %s264_s7  ;;  %p270_p13 = scmp.lt.s32.totalorder %s264_s7, %s264_s7 }
  0x1d   :  { %p271_p0 = por %p270_p13, %p269_p12 }
  0x1f   :  { %p272_p1 = pnand %p271_p0, %p265_p11 }
  0x21   :  { %275 = shalt.err (!%p272_p1)
}
  0x22   :  { %s306_s0 = smov 128   ;;  %s307_s8 = smov 8  }
  0x23   :  { %32 = dma.hbm_to_vmem [thread:$0]  %s379_s1, 2048, %s332_s15, [#allocation6], %s306_s0, %s306_s0, %s307_s8  }
  0x24   :  { %298 = dma.done.wait [#allocation3], 16  }
  0x25   :  { %299 = vsyncadd [#allocation3], 4294967280 }
  0x26   :  { %300 = dma.done.wait [#allocation6], 2048  }
  0x27   :  { %301 = vsyncadd [#allocation6], 4294965248  ;;  %v308_v0 = vmov 0.0|0.0   ;;  %vm309_vm0 = vmmov 0   ;;  %v310_v1 = vmov 0.0   ;;  %v42_v2 = vld [vmem:[#allocation5] sm:$0xff] }
  0x28   :  { %200 = vmatprep.subr.bf16.mxu0 %v308_v0  ;;  %197 = vmatprep.mubr.msk.f32.mxu0 %vm309_vm0, %v310_v1  ;;  %v43_v3 = vld [vmem:[#allocation5 + $0x8] sm:$0xff]  ;;  %v44_v4 = vld [vmem:[#allocation5 + $0x10] sm:$0xff]  ;;  %v45_v6 = vld [vmem:[#allocation5 + $0x18] sm:$0xff]  ;;  %s311_s12 = smov [#allocation7]  }
  0x29   :  { %v201_v5 = vpack.c.bf16 %v43_v3, %v42_v2  ;;  %v204_v7 = vpack.c.bf16 %v45_v6, %v44_v4  ;;  %v46_v8 = vld [vmem:[#allocation5 + $0x20] sm:$0xff]  ;;  %v47_v9 = vld [vmem:[#allocation5 + $0x28] sm:$0xff]  ;;  %v48_v11 = vld [vmem:[#allocation5 + $0x30] sm:$0xff]  ;;  %s138_s13 = sshll.u32 %s311_s12, 4  ;;  %s139_s13 = int_to_ptr.vmem [resolvable:$true] %s138_s13 }
  0x2a   :  { %v207_v10 = vpack.c.bf16 %v47_v9, %v46_v8  ;;  %v49_v12 = vld [vmem:[#allocation5 + $0x38] sm:$0xff]  ;;  %v50_v14 = vld [vmem:[#allocation5 + $0x40] sm:$0xff]  ;;  %v51_v15 = vld [vmem:[#allocation5 + $0x48] sm:$0xff]  ;;  %s276_s14 = scalar_lea.vmem %s139_s13, 16  ;;  %s280_s15 = scalar_lea.vmem %s139_s13, 32 }
  0x2b   :  { %202 = vmatpush3.bf16.msra.mxu0 %v201_v5  ;;  %v210_v13 = vpack.c.bf16 %v49_v12, %v48_v11  ;;  %v213_v16 = vpack.c.bf16 %v51_v15, %v50_v14  ;;  %v52_v17 = vld [vmem:[#allocation5 + $0x50] sm:$0xff]  ;;  %v53_v18 = vld [vmem:[#allocation5 + $0x58] sm:$0xff]  ;;  %v54_v20 = vld [vmem:[#allocation5 + $0x60] sm:$0xff]  ;;  %p277_p2 = scmp.ne.s32.totalorder %s139_s13, %s276_s14  ;;  %p281_p3 = scmp.lt.s32.totalorder %s139_s13, %s139_s13 }
  0x2c   :  { %203 = vmatprep.subr.bf16.mxu0 %v308_v0  ;;  %v216_v19 = vpack.c.bf16 %v53_v18, %v52_v17  ;;  %v55_v21 = vld [vmem:[#allocation5 + $0x68] sm:$0xff]  ;;  %v56_v23 = vld [vmem:[#allocation5 + $0x70] sm:$0xff]  ;;  %v57_v24 = vld [vmem:[#allocation5 + $0x78] sm:$0xff]  ;;  %p282_p4 = scmp.lt.s32.totalorder %s280_s15, %s276_s14 }
  0x2d   :  { %v219_v22 = vpack.c.bf16 %v55_v21, %v54_v20  ;;  %v222_v25 = vpack.c.bf16 %v57_v24, %v56_v23  ;;  %v41_v26 = vld [vmem:[#allocation2] sm:$0x1] }
  0x2e   :  { %v58_v27 = vld [vmem:[%s380_s2] sm:$0x1]  ;;  %p283_p5 = por %p282_p4, %p281_p3 }
  0x2f   :  { %205 = vmatpush3.bf16.msra.mxu0 %v204_v7 }
  0x30   :  { %206 = vmatprep.subr.bf16.mxu0 %v308_v0  ;;  %p284_p6 = pnand %p283_p5, %p277_p2 }
  0x33   :  { %208 = vmatpush3.bf16.msra.mxu0 %v207_v10 }
  0x34   :  { %209 = vmatprep.subr.bf16.mxu0 %v308_v0 }
  0x37   :  { %211 = vmatpush3.bf16.msra.mxu0 %v210_v13 }
  0x38   :  { %212 = vmatprep.subr.bf16.mxu0 %v308_v0 }
  0x3b   :  { %214 = vmatpush3.bf16.msra.mxu0 %v213_v16 }
  0x3c   :  { %215 = vmatprep.subr.bf16.mxu0 %v308_v0 }
  0x3f   :  { %217 = vmatpush3.bf16.msra.mxu0 %v216_v19 }
  0x40   :  { %218 = vmatprep.subr.bf16.mxu0 %v308_v0 }
  0x43   :  { %220 = vmatpush3.bf16.msra.mxu0 %v219_v22 }
  0x44   :  { %221 = vmatprep.subr.bf16.mxu0 %v308_v0 }
  0x47   :  { %223 = vmatpush3.bf16.msra.mxu0 %v222_v25 }
  0x4a   :  { %198 = vmatmul.mubr.f32.vlgmr.msra.gmra.mrb[0].mxu0 %v41_v26 }
 0x11d   :  { %v125_v28 = vpop.f32.mrb[0].mxu0 }
 0x11e   :  { %v126_v29 = vadd.f32 %v125_v28, %v58_v27  ;;  %v199_v30 = vpop.f32.mrb[1].mxu0 }
 0x120   :  { %v129_v31 = vmul.f32 0.01, %v126_v29 }
 0x122   :  { %v130_v32 = vmax.f32 %v126_v29, %v129_v31 }
 0x124   :  { %131 = vst [vmem:[#allocation7] sm:$0x1] %v130_v32 }
 0x125   :  { %287 = shalt.err (!%p284_p6)
}
 0x126   :  { %s288_s2 = scalar_lea.hbm %s381_s3, 16 }
 0x127   :  { %p289_p7 = scmp.ne.s32.totalorder %s381_s3, %s288_s2  ;;  %p292_p8 = scmp.lt.u32.totalorder %s288_s2, %s381_s3 }
 0x129   :  { %p294_p9 = pnand %p292_p8, %p289_p7 }
 0x12b   :  { %297 = shalt.err (!%p294_p9)
}
 0x12c   :  { %141 = dma.vmem_to_hbm [thread:$0]  %s139_s13, 16, %s381_s3, [#allocation4]  }
 0x12d   :  { %302 = dma.done.wait [#allocation4], 16  }
 0x12e   :  { %303 = vsyncadd [#allocation4], 4294967280 }
 0x12f   :  { %145 = vsyncpa [#allocation3], 1 }
 0x130   :  { %146 = vsyncpa [#allocation6], 1 }
 0x131   :  { %147 = vsyncpa [#allocation4], 1 }

</bundles_post_ra>
